<compile_context>
chip_gen: v7x
topology: tpu7x:2x2x1
jax: 0.10.0
libtpu: 0.0.40
codegen_flags: <defaults>
</compile_context>

<pallas_src>
import jax
import jax.numpy as jnp
from jax.experimental import pallas as pl
from jax.experimental.pallas import tpu as pltpu


def _quadrant_copy_kernel(x_ref, o_ref):
    # x_ref: (1, C, h_tile, Wh)    one H-tile of one quadrant of one image.
    # o_ref: (1, 1, C, h_tile, Wh) the matching slab of the output view.
    # Pure pass-through: the quadrant gather is expressed in the BlockSpec
    # index_map (i.e. done by the DMA engine), so no vld/vst shuffle here.
    o_ref[0, 0] = x_ref[0]


def _whole_image_kernel(x_ref, o_ref):
    # Fallback for lane/sublane-misaligned quadrants (e.g. W = 224 -> Wh = 112).
    # x_ref: (1, C, H, W); o_ref: (4, 1, C, Hh, Wh).
    _, C, H, W = x_ref.shape
    Hh, Wh = H // 2, W // 2
    o_ref[0, 0] = x_ref[0, :, :Hh, :Wh]   # top-left
    o_ref[1, 0] = x_ref[0, :, :Hh, Wh:]   # top-right
    o_ref[2, 0] = x_ref[0, :, Hh:, :Wh]   # bottom-left
    o_ref[3, 0] = x_ref[0, :, Hh:, Wh:]   # bottom-right


def _vmem_cap_bytes():
    """~3/4 of physical VMEM; default to the v7x 64 MiB floor if unknown."""
    phys = 64 * 1024 * 1024
    try:
        phys = int(getattr(pltpu.get_tpu_info(), "vmem_capacity_bytes", phys))
    except Exception:
        pass
    return max(16 * 1024 * 1024, (phys * 3) // 4)


def tta_4views(x):
    """Pallas TTA: x (B, C, H, W) -> (4*B, C, H//2, W//2), order [tl, tr, bl, br]."""
    B, C, H, W = x.shape
    assert H % 2 == 0 and W % 2 == 0, "TTA4Views needs even H and W (torch.cat constraint)"
    Hh, Wh = H // 2, W // 2

    itemsize = jnp.dtype(x.dtype).itemsize
    sublane = max(8, 32 // itemsize)          # 8 f32, 16 bf16, 32 int8
    cap = _vmem_cap_bytes()

    if Hh % sublane == 0 and Wh % 128 == 0:
        # ---- fast path: quadrant selection in the BlockSpec (strided DMA) ----
        # Pick the largest H-tile (divisor of Hh, multiple of sublane) whose
        # block stays <= ~8 MiB, so 2x input + 2x output double buffers fit in
        # ~32 MiB on every chip (incl. v7x's 64 MiB VMEM).
        row_bytes = C * Wh * itemsize
        target_block_bytes = 8 * 1024 * 1024
        max_rows = max(sublane, ((target_block_bytes // max(row_bytes, 1)) // sublane) * sublane)
        m = Hh // sublane
        h_tile = sublane
        for d in range(m, 0, -1):
            if m % d == 0 and d * sublane <= max_rows:
                h_tile = d * sublane
                break
        n_h = Hh // h_tile
        block_bytes = C * h_tile * Wh * itemsize
        vmem_limit = int(min(max(6 * block_bytes, 32 * 1024 * 1024), cap))

        out = pl.pallas_call(
            _quadrant_copy_kernel,
            out_shape=jax.ShapeDtypeStruct((4, B, C, Hh, Wh), x.dtype),
            grid=(B, 4, n_h),
            in_specs=[
                # One H-tile of one quadrant per grid step; the quadrant gather
                # happens in this index_map (row half = q // 2, col half = q % 2).
                pl.BlockSpec(
                    (1, C, h_tile, Wh),
                    lambda b, q, h: (b, 0, (q // 2) * n_h + h, q % 2),
                ),
            ],
            out_specs=pl.BlockSpec(
                (1, 1, C, h_tile, Wh),
                lambda b, q, h: (q, b, 0, h, 0),
            ),
            compiler_params=pltpu.CompilerParams(
                dimension_semantics=("parallel", "parallel", "parallel"),
                vmem_limit_bytes=vmem_limit,
            ),
        )(x)
    else:
        # ---- fallback: whole-image block, quadrant split via static slices ----
        # Last two block dims equal the full array dims, so legal for any even
        # H, W regardless of (8, 128) alignment.
        per_image = C * H * W * itemsize
        vmem_limit = int(min(max(6 * per_image, 32 * 1024 * 1024), cap))

        out = pl.pallas_call(
            _whole_image_kernel,
            out_shape=jax.ShapeDtypeStruct((4, B, C, Hh, Wh), x.dtype),
            grid=(B,),
            in_specs=[pl.BlockSpec((1, C, H, W), lambda b: (b, 0, 0, 0))],
            out_specs=pl.BlockSpec((4, 1, C, Hh, Wh), lambda b: (0, b, 0, 0, 0)),
            compiler_params=pltpu.CompilerParams(
                dimension_semantics=("parallel",),
                vmem_limit_bytes=vmem_limit,
            ),
        )(x)

    # (4, B, C, Hh, Wh) -> (4*B, C, Hh, Wh): contiguous reshape, matches
    # torch.cat([tl, tr, bl, br], dim=0) ordering exactly.
    return out.reshape(4 * B, C, Hh, Wh)


def tta_4views_ref(x):
    """Pure-JAX reference with identical semantics."""
    _, _, H, W = x.shape
    Hh, Wh = H // 2, W // 2
    tl = x[:, :, :Hh, :Wh]
    tr = x[:, :, :Hh, Wh:]
    bl = x[:, :, Hh:, :Wh]
    br = x[:, :, Hh:, Wh:]
    return jnp.concatenate([tl, tr, bl, br], axis=0)


if __name__ == "__main__":
    key = jax.random.PRNGKey(0)
    k1, k2 = jax.random.split(key)

    # Path 1: lane-misaligned quadrants (Wh = 8) -> whole-image fallback.
    x1 = jax.random.normal(k1, (2, 4, 16, 16), dtype=jnp.float32)
    out1 = jax.block_until_ready(tta_4views(x1))
    ref1 = tta_4views_ref(x1)
    assert out1.shape == (8, 4, 8, 8), out1.shape
    assert jnp.array_equal(out1, ref1), "fallback path mismatch vs pure-JAX reference"
    assert jnp.array_equal(out1[0], x1[0, :, :8, :8])    # top-left
    assert jnp.array_equal(out1[2], x1[0, :, :8, 8:])    # top-right
    assert jnp.array_equal(out1[4], x1[0, :, 8:, :8])    # bottom-left
    assert jnp.array_equal(out1[6], x1[0, :, 8:, 8:])    # bottom-right

    # Path 2: lane-aligned quadrants (Hh = 8, Wh = 128) -> BlockSpec-gather fast path.
    x2 = jax.random.normal(k2, (1, 3, 16, 256), dtype=jnp.float32)
    out2 = jax.block_until_ready(tta_4views(x2))
    ref2 = tta_4views_ref(x2)
    assert out2.shape == (4, 3, 8, 128), out2.shape
    assert jnp.array_equal(out2, ref2), "fast path mismatch vs pure-JAX reference"
    assert jnp.array_equal(out2[0], x2[0, :, :8, :128])   # top-left
    assert jnp.array_equal(out2[1], x2[0, :, :8, 128:])   # top-right
    assert jnp.array_equal(out2[2], x2[0, :, 8:, :128])   # bottom-left
    assert jnp.array_equal(out2[3], x2[0, :, 8:, 128:])   # bottom-right

    print("KERNEL_OK")
</pallas_src>

<mosaic_0001>
module attributes {stable_mosaic.version = 11 : i64} {
  func.func @_whole_image_kernel(%arg0: i32, %arg1: memref<1x4x16x16xf32, #tpu.memory_space<vmem>>, %arg2: memref<4x1x4x8x8xf32, #tpu.memory_space<vmem>>) attributes {dimension_semantics = [#tpu.dimension_semantics<parallel>], iteration_bounds = array<i64: 2>, scalar_prefetch = 0 : i64, scratch_operands = 0 : i64, tpu.core_type = #tpu.core_type<tc>, window_params = [{transform_indices = @transform_0, window_bounds = array<i64: 1, 4, 16, 16>}, {transform_indices = @transform_1, window_bounds = array<i64: 4, 1, 4, 8, 8>}]} {
    %c0 = arith.constant 0 : index
    %c0_0 = arith.constant 0 : index
    %c0_1 = arith.constant 0 : index
    %c0_2 = arith.constant 0 : index
    %0 = vector.load %arg1[%c0, %c0_0, %c0_1, %c0_2] : memref<1x4x16x16xf32, #tpu.memory_space<vmem>>, vector<1x4x8x8xf32>
    %1 = vector.shape_cast %0 : vector<1x4x8x8xf32> to vector<4x8x8xf32>
    %c0_3 = arith.constant 0 : index
    %c0_4 = arith.constant 0 : index
    %c0_5 = arith.constant 0 : index
    %c0_6 = arith.constant 0 : index
    %c0_7 = arith.constant 0 : index
    %2 = vector.load %arg2[%c0_3, %c0_4, %c0_5, %c0_6, %c0_7] : memref<4x1x4x8x8xf32, #tpu.memory_space<vmem>>, vector<1x1x4x8x8xf32>
    %3 = vector.shape_cast %2 : vector<1x1x4x8x8xf32> to vector<4x8x8xf32>
    %4 = vector.shape_cast %1 : vector<4x8x8xf32> to vector<1x1x4x8x8xf32>
    tpu.vector_store %arg2[%c0_3, %c0_4, %c0_5, %c0_6, %c0_7], %4 {strides = array<i32>} : memref<4x1x4x8x8xf32, #tpu.memory_space<vmem>>, vector<1x1x4x8x8xf32>,
    %c0_8 = arith.constant 0 : index
    %c0_9 = arith.constant 0 : index
    %c0_10 = arith.constant 0 : index
    %c8 = arith.constant 8 : index
    %5 = vector.load %arg1[%c0_8, %c0_9, %c0_10, %c8] : memref<1x4x16x16xf32, #tpu.memory_space<vmem>>, vector<1x4x8x8xf32>
    %6 = vector.shape_cast %5 : vector<1x4x8x8xf32> to vector<4x8x8xf32>
    %c1 = arith.constant 1 : index
    %c0_11 = arith.constant 0 : index
    %c0_12 = arith.constant 0 : index
    %c0_13 = arith.constant 0 : index
    %c0_14 = arith.constant 0 : index
    %7 = vector.load %arg2[%c1, %c0_11, %c0_12, %c0_13, %c0_14] : memref<4x1x4x8x8xf32, #tpu.memory_space<vmem>>, vector<1x1x4x8x8xf32>
    %8 = vector.shape_cast %7 : vector<1x1x4x8x8xf32> to vector<4x8x8xf32>
    %9 = vector.shape_cast %6 : vector<4x8x8xf32> to vector<1x1x4x8x8xf32>
    tpu.vector_store %arg2[%c1, %c0_11, %c0_12, %c0_13, %c0_14], %9 {strides = array<i32>} : memref<4x1x4x8x8xf32, #tpu.memory_space<vmem>>, vector<1x1x4x8x8xf32>,
    %c0_15 = arith.constant 0 : index
    %c0_16 = arith.constant 0 : index
    %c8_17 = arith.constant 8 : index
    %c0_18 = arith.constant 0 : index
    %10 = vector.load %arg1[%c0_15, %c0_16, %c8_17, %c0_18] : memref<1x4x16x16xf32, #tpu.memory_space<vmem>>, vector<1x4x8x8xf32>
    %11 = vector.shape_cast %10 : vector<1x4x8x8xf32> to vector<4x8x8xf32>
    %c2 = arith.constant 2 : index
    %c0_19 = arith.constant 0 : index
    %c0_20 = arith.constant 0 : index
    %c0_21 = arith.constant 0 : index
    %c0_22 = arith.constant 0 : index
    %12 = vector.load %arg2[%c2, %c0_19, %c0_20, %c0_21, %c0_22] : memref<4x1x4x8x8xf32, #tpu.memory_space<vmem>>, vector<1x1x4x8x8xf32>
    %13 = vector.shape_cast %12 : vector<1x1x4x8x8xf32> to vector<4x8x8xf32>
    %14 = vector.shape_cast %11 : vector<4x8x8xf32> to vector<1x1x4x8x8xf32>
    tpu.vector_store %arg2[%c2, %c0_19, %c0_20, %c0_21, %c0_22], %14 {strides = array<i32>} : memref<4x1x4x8x8xf32, #tpu.memory_space<vmem>>, vector<1x1x4x8x8xf32>,
    %c0_23 = arith.constant 0 : index
    %c0_24 = arith.constant 0 : index
    %c8_25 = arith.constant 8 : index
    %c8_26 = arith.constant 8 : index
    %15 = vector.load %arg1[%c0_23, %c0_24, %c8_25, %c8_26] : memref<1x4x16x16xf32, #tpu.memory_space<vmem>>, vector<1x4x8x8xf32>
    %16 = vector.shape_cast %15 : vector<1x4x8x8xf32> to vector<4x8x8xf32>
    %c3 = arith.constant 3 : index
    %c0_27 = arith.constant 0 : index
    %c0_28 = arith.constant 0 : index
    %c0_29 = arith.constant 0 : index
    %c0_30 = arith.constant 0 : index
    %17 = vector.load %arg2[%c3, %c0_27, %c0_28, %c0_29, %c0_30] : memref<4x1x4x8x8xf32, #tpu.memory_space<vmem>>, vector<1x1x4x8x8xf32>
    %18 = vector.shape_cast %17 : vector<1x1x4x8x8xf32> to vector<4x8x8xf32>
    %19 = vector.shape_cast %16 : vector<4x8x8xf32> to vector<1x1x4x8x8xf32>
    tpu.vector_store %arg2[%c3, %c0_27, %c0_28, %c0_29, %c0_30], %19 {strides = array<i32>} : memref<4x1x4x8x8xf32, #tpu.memory_space<vmem>>, vector<1x1x4x8x8xf32>,
    return
  }
  func.func @transform_0(%arg0: i32) -> (i32, i32, i32, i32) {
    %c0_i32 = arith.constant 0 : i32
    %c0_i32_0 = arith.constant 0 : i32
    %c0_i32_1 = arith.constant 0 : i32
    %c0_i32_2 = arith.constant 0 : i32
    return %arg0, %c0_i32, %c0_i32_0, %c0_i32_1 : i32, i32, i32, i32
  }
  func.func @transform_1(%arg0: i32) -> (i32, i32, i32, i32, i32) {
    %c0_i32 = arith.constant 0 : i32
    %c0_i32_0 = arith.constant 0 : i32
    %c0_i32_1 = arith.constant 0 : i32
    %c0_i32_2 = arith.constant 0 : i32
    %c0_i32_3 = arith.constant 0 : i32
    return %c0_i32, %arg0, %c0_i32_0, %c0_i32_1, %c0_i32_2 : i32, i32, i32, i32, i32
  }
}

</mosaic_0001>

<bundles_post_ra>
// kernel: tpu_custom_call.1
= control target key start
LH: loop header
LB: loop body
LE: loop exit
PB: predicated region body
PF: predicated region fallthrough
CT: control target
= control target key end

     0   :  { %6 = vsyncpa [#allocation3], 0  ;;  %s685_s0 = inlined_call_operand.hbm [shape: f32[2,4,16,16], index: 0, kind: input, shape index: {}]   ;;  %s686_s1 = inlined_call_operand.hbm [shape: f32[4,2,4,8,8], index: 1, kind: output, shape index: {}]  }
   0x1   :  { %8 = vsyncpa [#allocation3 + $0x1], 0 }
   0x2   :  { %9 = vsyncpa [#allocation4], 0 }
   0x3   :  { %11 = vsyncpa [#allocation4 + $0x1], 0  ;;  %s500_s6 = smov 0   ;;  %s502_s7 = smov 0  }
   0x4   :  { %s504_s8 = smov 0   ;;  %s506_s9 = smov 0  }
   0x5 LB: > { %s521_s10 = sadd.s32 4294967295, %s477_s9   ;;  %s319_s11 = sadd.s32 4294967294, %s477_s9   ;;  %s477_s9 = sphi %s506_s9, %s699_s9   ;;  %s473_s8 = sphi %s504_s8, %s698_s8   ;;  %s469_s7 = sphi %s502_s7, %s697_s7   ;;  %s465_s6 = sphi %s500_s6, %s696_s6  }
   0x6   : > { %s525_s12 = sadd.s32 1, %s477_s9   ;;  %s24_s13 = sadd.s32 1, %s473_s8 }
   0x7   : > { %s21_s14 = ssub.s32 %s477_s9, %s525_s12  ;;  %p31_p0 = scmp.ne.s32.totalorder %s473_s8, %s469_s7 }
   0x8   : > { %p22_p1 = scmp.eq.s32.totalorder %s21_s14, 0  ;;  %p32_p2 = scmp.eq.s32.totalorder %s477_s9, 0 }
   0x9   : > { %p37_p3 = scmp.ne.s32.totalorder %s469_s7, %s465_s6  ;;  %p38_p4 = scmp.eq.s32.totalorder %s521_s10, 0 }
   0xa   : > { %s537_s15 = scalar_select %p22_p1, %s473_s8, %s24_s13  }
   0xb   : > { %p539_p5 = por %p32_p2, %p31_p0  ;;  %p543_p6 = por %p38_p4, %p37_p3 }
   0xc   : > { %p61_p7 = scmp.eq.s32.totalorder %s521_s10, 1  ;;  %p67_p8 = scmp.eq.s32.totalorder %s319_s11, 1 }
   0xd   : > { %p365_p10 = scmp.lt.s32.totalorder %s477_s9, 2  ;;  %s87_s20 = sand.u32 1, %s473_s8  }
   0xe   : > { %p550_p11 = por %p61_p7, %p31_p0  ;;  %p554_p12 = por %p67_p8, %p37_p3 }
   0xf   : > { %s345_s21 = sshll.u32 %s477_s9, 10  ;;  %s322_s22 = sshll.u32 %s87_s20, 6 }
  0x10   : > { %s690_s18 = scalar_select %p550_p11, 1, 0 }
  0x11   : > { %s691_s19 = scalar_select %p554_p12, 1, 0 }
  0x12   : > { %s563_s25 = scalar_lea.hbm %s685_s0, %s345_s21  ;;  %s91_s26 = scalar_lea.vmem [#allocation2], %s322_s22 }
  0x13   : > { %s98_s27 = sshll.u32 %s91_s26, 4  ;;  %p567_p13 = pnand %p365_p10, %p539_p5  ;;  %s571_s27 = int_to_ptr.vmem [resolvable:$true] %s98_s27 }
  0x14   : > { %s573_s29 = scalar_lea.sflag [#allocation3], %s87_s20  ;;  %s409_s30 = scalar_lea.hbm %s563_s25, 1024 }
  0x15   : > { %p410_p0 = scmp.ne.s32.totalorder %s563_s25, %s409_s30  ;;  %p411_p1 = pneg %p567_p13 }
  0x16   : > { %s414_s4 = scalar_lea.hbm %s685_s0, 2048  ;;  %p415_p4 = scmp.lt.u32.totalorder %s563_s25, %s685_s0 }
  0x17   : > { %p412_p2 = pnand %p411_p1, %p410_p0  ;;  %p416_p5 = scmp.lt.u32.totalorder %s414_s4, %s409_s30 }
  0x18   : > { %p418_p8 = scmp.lt.u32.totalorder %s409_s30, %s563_s25 }
  0x19   : > { %p413_p3 = pneg %p412_p2  ;;  %p417_p7 = por %p416_p5, %p415_p4 }
  0x1b   : > { %p419_p10 = por %p418_p8, %p417_p7 }
  0x1d   : > { %p420_p9 = pnand %p419_p10, %p413_p3 }
  0x1f   : > { %423 = shalt.err (!%p420_p9)
}
  0x20   : > { %s424_s13 = scalar_lea.vmem %s571_s27, 1024  ;;  %s479_s14 = smov [#allocation2]  }
  0x21   : > { %p425_p0 = scmp.ne.s32.totalorder %s571_s27, %s424_s13  ;;  %s429_s16 = sshll.u32 %s479_s14, 4  ;;  %s430_s16 = int_to_ptr.vmem [resolvable:$false] %s429_s16 }
  0x22   : > { %s431_s20 = scalar_lea.vmem %s430_s16, 2048  ;;  %p432_p11 = scmp.lt.s32.totalorder %s571_s27, %s430_s16 }
  0x23   : > { %p427_p2 = pnand %p425_p0, %p411_p1  ;;  %p433_p4 = scmp.lt.s32.totalorder %s431_s20, %s424_s13 }
  0x25   : > { %p428_p12 = pneg %p427_p2  ;;  %p434_p5 = por %p433_p4, %p432_p11 }
  0x27   : > { %p435_p7 = pnand %p434_p5, %p428_p12 }
  0x29   : > { %438 = shalt.err (!%p435_p7)
}
  0x2a   : > { %s480_s21 = smov 128   ;;  %s481_s22 = smov 8  }
  0x2b   : > { %360 = dma.hbm_to_vmem [thread:$0]  (!%p567_p13), %s563_s25, 1024, %s571_s27, %s573_s29, %s480_s21, %s480_s21, %s481_s22  }
  0x2c   : > { %p325_p9 = scmp.ge.s32.totalorder %s477_s9, 1  ;;  %p106_p1 = scmp.lt.s32.totalorder %s477_s9, 3 }
  0x2e   : > { %p107_p3 = pnand %p325_p9, %p106_p1 }
  0x2f   : > { %s604_s23 = sand.u32 (!%p107_p3), 1, %s469_s7  }
  0x30   : > { %110 = sbr.rel (%p107_p3) target bundleno = 197 (0xc5), region = 24  ;;  %s326_s24 = sshll.u32 (!%p107_p3), %s604_s23, 6 }
  0x31   : > { %s113_s26 = scalar_lea.sflag (!%p107_p3), [#allocation3], %s604_s23  ;;  %s116_s30 = scalar_lea.vmem (!%p107_p3), [#allocation2], %s326_s24 }
  0x37   : > { %456 = dma.done.wait (%p543_p6), %s113_s26, 1024  }
  0x38   : > { %458 = vsyncadd (%p543_p6), %s113_s26, 4294966272  ;;  %s327_s25 = sshll.u32 %s604_s23, 7  ;;  %v146_v0 = vld [vmem:[%s116_s30 + $0x20] sm:$0xff]  ;;  %v147_v2 = vld [vmem:[%s116_s30 + $0x30] sm:$0xff]  ;;  %vm139_vm0 = vcmask 64512   ;;  %s482_s27 = smov 120  }
  0x39   : > { %v144_v1 = vld [vmem:[%s116_s30] sm:$0xff]  ;;  %156 = vrot.lane.b32.xlu1 %v146_v0, %s482_s27  ;;  %v145_v3 = vld [vmem:[%s116_s30 + $0x10] sm:$0xff]  ;;  %v179_v4 = vld [vmem:[%s116_s30 + $0x18] sm:$0xff]  ;;  %s613_s28 = scalar_lea.vmem [#allocation5], %s327_s25  ;;  %s204_s17 = scalar_lea.sflag [#allocation4], %s604_s23 }
  0x3a   : > { %152 = vrot.lane.b32.xlu0 %v144_v1, %s482_s27  ;;  %140 = vst.msk [vmem:[%s613_s28] sm:$0xff] %vm139_vm0, %v144_v1  ;;  %142 = vst.msk [vmem:[%s613_s28 + $0x10] sm:$0xff] %vm139_vm0, %v146_v0  ;;  %v178_v5 = vld [vmem:[%s116_s30 + $0x8] sm:$0xff] }
  0x3b   : > { %143 = vst.msk [vmem:[%s613_s28 + $0x18] sm:$0xff] %vm139_vm0, %v147_v2  ;;  %v181_v6 = vld [vmem:[%s116_s30 + $0x38] sm:$0xff]  ;;  %v180_v7 = vld [vmem:[%s116_s30 + $0x28] sm:$0xff]  ;;  %333 = vst.msk [vmem:[%s613_s28 + $0x48] sm:$0xff] %vm139_vm0, %v179_v4 }
  0x3c   : > { %141 = vst.msk [vmem:[%s613_s28 + $0x8] sm:$0xff] %vm139_vm0, %v145_v3  ;;  %332 = vst.msk [vmem:[%s613_s28 + $0x40] sm:$0xff] %vm139_vm0, %v178_v5 }
  0x3d   : > { %334 = vst.msk [vmem:[%s613_s28 + $0x50] sm:$0xff] %vm139_vm0, %v180_v7  ;;  %335 = vst.msk [vmem:[%s613_s28 + $0x58] sm:$0xff] %vm139_vm0, %v181_v6  ;;  %158 = vrot.lane.b32.xlu1 %v147_v2, %s482_s27 }
  0x3e   : > { %154 = vrot.lane.b32.xlu0 %v145_v3, %s482_s27 }
  0x41   : > { %188 = vrot.lane.b32.xlu1 %v179_v4, %s482_s27 }
  0x42   : > { %186 = vrot.lane.b32.xlu0 %v178_v5, %s482_s27 }
  0x45   : > { %192 = vrot.lane.b32.xlu1 %v181_v6, %s482_s27 }
  0x46   : > { %190 = vrot.lane.b32.xlu0 %v180_v7, %s482_s27 }
  0xab   : > { %v157_v8 = vpop.permute.xlu1 %156 }
  0xac   : > { %v153_v9 = vpop.permute.xlu0 %152  ;;  %330 = vst.msk [vmem:[%s613_s28 + $0x30] sm:$0xff] %vm139_vm0, %v157_v8 }
  0xad   : > { %328 = vst.msk [vmem:[%s613_s28 + $0x20] sm:$0xff] %vm139_vm0, %v153_v9 }
  0xaf   : > { %v159_v10 = vpop.permute.xlu1 %158 }
  0xb0   : > { %v155_v11 = vpop.permute.xlu0 %154  ;;  %331 = vst.msk [vmem:[%s613_s28 + $0x38] sm:$0xff] %vm139_vm0, %v159_v10 }
  0xb1   : > { %329 = vst.msk [vmem:[%s613_s28 + $0x28] sm:$0xff] %vm139_vm0, %v155_v11 }
  0xb3   : > { %v189_v12 = vpop.permute.xlu1 %188 }
  0xb4   : > { %v187_v13 = vpop.permute.xlu0 %186  ;;  %337 = vst.msk [vmem:[%s613_s28 + $0x68] sm:$0xff] %vm139_vm0, %v189_v12 }
  0xb5   : > { %336 = vst.msk [vmem:[%s613_s28 + $0x60] sm:$0xff] %vm139_vm0, %v187_v13 }
  0xb7   : > { %v193_v14 = vpop.permute.xlu1 %192 }
  0xb8   : > { %v191_v15 = vpop.permute.xlu0 %190  ;;  %339 = vst.msk [vmem:[%s613_s28 + $0x78] sm:$0xff] %vm139_vm0, %v193_v14 }
  0xb9   : > { %338 = vst.msk [vmem:[%s613_s28 + $0x70] sm:$0xff] %vm139_vm0, %v191_v15 }
  0xba   : > { %s346_s29 = sshll.u32 %s521_s10, 9  ;;  %s233_s2 = sshll.u32 %s613_s28, 4  ;;  %s234_s2 = int_to_ptr.vmem [resolvable:$true] %s233_s2 }
  0xbb   : > { %s216_s5 = scalar_lea.hbm %s686_s1, %s346_s29  ;;  %s483_s11 = smov 512  }
  0xbc   : > { %p693_p6 = scmp.ne.s32.totalorder %s690_s18, 0  ;;  %s484_s13 = smov 1024  }
  0xbd   : > { %s485_s14 = smov 4   ;;  %s486_s16 = smov 128  }
  0xbe   : > { %349 = sst [smem:[#allocation7]] (%p693_p6), %s483_s11  ;;  %s487_s10 = smov 8  }
  0xbf   : > { %350 = sst [smem:[#allocation7 + $0x1]] (%p693_p6), %s484_s13  ;;  %s488_s20 = smov [#allocation6]  }
  0xc0   : > { %351 = sst [smem:[#allocation7 + $0x2]] (%p693_p6), %s485_s14  ;;  %s489_s21 = smov 0  }
  0xc1   : > { %352 = sst [smem:[#allocation7 + $0x3]] (%p693_p6), %s486_s16 }
  0xc2   : > { %353 = sst [smem:[#allocation7 + $0x4]] (%p693_p6), %s486_s16 }
  0xc3   : > { %354 = sst [smem:[#allocation7 + $0x5]] (%p693_p6), %s487_s10 }
  0xc4   : > { %355 = dma.general (%p693_p6), %s234_s2, 2048, %s216_s5, %s204_s17, %s488_s20, [#allocation7], %s489_s21, 0  }
  0xc5 PF: > { %s261_s22 = sand.u32 1, %s465_s6   ;;  %p694_p11 = scmp.ne.s32.totalorder %s691_s19, 0 }
  0xc6   : > { %p695_p12 = scmp.ge.s32.totalorder %s477_s9, 2  ;;  %s262_s23 = scalar_lea.sflag [#allocation4], %s261_s22 }
  0xc8   : > { %p362_p13 = pnand %p695_p12, %p694_p11 }
  0xca   : > { %460 = dma.done.wait (!%p362_p13), %s262_s23, 2048  }
  0xcb   : > { %462 = vsyncadd (!%p362_p13), %s262_s23, 4294965248  ;;  %p14_p8 = scmp.ge.s32.totalorder %s525_s12, 4   ;;  %s696_s6 = smov %s469_s7 }
  0xcc   : > { %s697_s7 = smov %s473_s8  ;;  %s698_s8 = smov %s537_s15 }
  0xcd   : > { %s699_s9 = smov %s525_s12  ;;  %16 = sbr.rel (!%p14_p8) target bundleno = 5 (0x5), region = 77 }
  0xd4   :  { %267 = vsyncpa [#allocation3], 1 }
  0xd5   :  { %269 = vsyncpa [#allocation3 + $0x1], 1 }
  0xd6   :  { %270 = vsyncpa [#allocation4], 1 }
  0xd7   :  { %272 = vsyncpa [#allocation4 + $0x1], 1 }

</bundles_post_ra>
